<compile_context>
chip_gen: v7x
topology: tpu7x:2x2x1
jax: 0.10.0
libtpu: 0.0.40
codegen_flags: <defaults>
</compile_context>

<pallas_src>
import functools

import jax
import jax.numpy as jnp
from jax.experimental import pallas as pl
from jax.experimental.pallas import tpu as pltpu

_LANE = 128      # lane (last-dim) alignment for padded feature dims
_SUBLANE = 16    # batch-tile alignment safe for both f32 (8) and bf16 (16) packing


def _round_up(x, m):
    return (x + m - 1) // m * m


def _mlp_kernel(x_ref, w1_ref, b1_ref, w2_ref, b2_ref, w3_ref, b3_ref, o_ref):
    # Cast fused with the first load -> MXU bf16-in / f32-accumulate fast path
    # (a no-op when the prepared weights are f32).
    x = x_ref[...].astype(w1_ref.dtype)

    # Layer 1: Linear + ReLU (bias add & ReLU on the VPU, in the f32 accumulator).
    h1 = jnp.dot(x, w1_ref[...], preferred_element_type=jnp.float32) + b1_ref[...]
    h1 = jnp.maximum(h1, 0.0)

    # Layer 2: Linear + ReLU (activation re-cast to weight dtype keeps the MXU on
    # the fast path; no-op when everything is f32).
    h2 = jnp.dot(h1.astype(w2_ref.dtype), w2_ref[...],
                 preferred_element_type=jnp.float32) + b2_ref[...]
    h2 = jnp.maximum(h2, 0.0)

    # Layer 3: Linear (no activation); single cast at the final store.
    out = jnp.dot(h2.astype(w3_ref.dtype), w3_ref[...],
                  preferred_element_type=jnp.float32) + b3_ref[...]
    o_ref[...] = out.astype(o_ref.dtype)


def prepare_params(w1, b1, w2, b2, w3, b3, *,
                   compute_dtype=jnp.bfloat16, pad_output=False):
    """One-time layout conversion (call OUTSIDE the per-step hot path).

    PyTorch nn.Linear weights (out, in) -> (in, out). Internal (hidden) feature
    dims are zero-padded to multiples of 128 for lane-dense intermediates; the
    INPUT (contraction) dim of W1 is deliberately left unpadded so the wrapper
    never has to pad/copy x, and the OUTPUT dim is left unpadded by default so
    no trailing slice copy is needed. Zero padding is exact: padded hidden units
    have zero weight/bias -> ReLU(0)=0 and contribute nothing downstream.
    Weights are cast to `compute_dtype` (bf16 by default: native MXU path,
    half the resident VMEM); biases stay f32 (added in the f32 accumulator).
    """
    def _pad2(a, rows, cols):
        r, c = a.shape
        return jnp.pad(a, ((0, rows - r), (0, cols - c)))

    w1t = jnp.asarray(w1).T   # (in,  h1)
    w2t = jnp.asarray(w2).T   # (h1,  h2)
    w3t = jnp.asarray(w3).T   # (h2,  out)
    in_f, h1 = w1t.shape
    h2 = w2t.shape[1]
    out_f = w3t.shape[1]

    h1p = _round_up(h1, _LANE)
    h2p = _round_up(h2, _LANE)
    outp = _round_up(out_f, _LANE) if pad_output else out_f

    w1t = _pad2(w1t, in_f, h1p)
    w2t = _pad2(w2t, h1p, h2p)
    w3t = _pad2(w3t, h2p, outp)
    if compute_dtype is not None:
        w1t = w1t.astype(compute_dtype)
        w2t = w2t.astype(compute_dtype)
        w3t = w3t.astype(compute_dtype)

    def _pad_b(b, cols):
        b = jnp.asarray(b, jnp.float32).reshape(1, -1)
        return jnp.pad(b, ((0, 0), (0, cols - b.shape[1])))

    return (w1t, _pad_b(b1, h1p), w2t, _pad_b(b2, h2p), w3t, _pad_b(b3, outp))


def _vmem_budget_bytes():
    """Physical VMEM of this TPU generation minus ~12.5% headroom for compiler scratch."""
    try:
        cap = int(getattr(pltpu.get_tpu_info(), "vmem_capacity_bytes", 0))
        if cap > 0:
            return cap * 7 // 8        # ~56 MiB on v7x, ~112 MiB on v5e/v6e
    except Exception:
        pass
    return 56 << 20                    # conservative fallback: fits v7x's 64 MiB/TC


@functools.partial(jax.jit, static_argnames=("out_features", "block_b"))
def torch_mind_forward(x, params, out_features, block_b=1024):
    """Fused MLP forward. x: (B, input_size); params from prepare_params()."""
    w1, b1, w2, b2, w3, b3 = params
    B, in_f = x.shape
    assert in_f == w1.shape[0], "input feature dim must match prepared W1"
    h1p = w1.shape[1]
    h2p = w2.shape[1]
    out_cols = w3.shape[1]
    out_dtype = x.dtype

    # Batch tile: multiple of 16 (f32 & bf16 sublane packing), <= block_b, and
    # capped so the grid has >= 2 steps when the batch allows it (feeds both
    # TensorCores on v7x; negligible extra cost on single-TC v5e/v6e).
    tb = min(_round_up(block_b, _SUBLANE), _round_up(B, _SUBLANE))
    if B >= 2 * _SUBLANE:
        tb = min(tb, _round_up(pl.cdiv(B, 2), _SUBLANE))
    b_pad = _round_up(B, tb)
    grid = (b_pad // tb,)

    # Pad only the batch dim, and only when the tile doesn't divide it. The input
    # feature dim stays at its natural width and the compute-dtype cast happens
    # inside the kernel, so there is no extra full-array HBM pad/cast pass.
    x_in = x if b_pad == B else jnp.pad(x, ((0, b_pad - B), (0, 0)))

    # Advisory cost estimate for XLA scheduling around this custom call.
    flops = 2 * b_pad * (in_f * h1p + h1p * h2p + h2p * out_cols)
    param_bytes = sum(int(p.size) * jnp.dtype(p.dtype).itemsize for p in params)
    io_bytes = (int(x_in.size) * jnp.dtype(x_in.dtype).itemsize
                + b_pad * out_cols * jnp.dtype(out_dtype).itemsize)
    cost = pl.CostEstimate(flops=flops, transcendentals=0,
                           bytes_accessed=param_bytes + io_bytes)

    # VMEM: residents are single-buffered (Buffered(1)); x/out tiles are
    # double-buffered by the pipeline; f32 intermediates live per-tile.
    tile_bytes = 2 * tb * (in_f * jnp.dtype(x_in.dtype).itemsize
                           + out_cols * jnp.dtype(out_dtype).itemsize)
    act_bytes = 2 * tb * max(h1p, h2p) * 4
    needed = param_bytes + tile_bytes + act_bytes
    vmem_limit = int(min(_vmem_budget_bytes(), max(32 << 20, 2 * needed)))
    # TODO(synk): if resident (bf16) params alone exceed the per-core budget
    # (very large hidden sizes on v7x's 64 MiB), add an N-tiling grid axis over
    # the hidden/output dims instead of pinning all three weight matrices resident.

    def _resident(a):
        zeros = (0,) * a.ndim
        # Constant block index -> single buffer (default double-buffering would
        # just duplicate the resident parameters in VMEM).
        return pl.BlockSpec(a.shape, lambda i, z=zeros: z,
                            pipeline_mode=pl.Buffered(1))

    out = pl.pallas_call(
        _mlp_kernel,
        out_shape=jax.ShapeDtypeStruct((b_pad, out_cols), out_dtype),
        grid=grid,
        in_specs=[
            pl.BlockSpec((tb, in_f), lambda i: (i, 0)),      # x: tiled over batch
            _resident(w1), _resident(b1),                    # params: pinned resident,
            _resident(w2), _resident(b2),                    # single-buffered
            _resident(w3), _resident(b3),
        ],
        out_specs=pl.BlockSpec((tb, out_cols), lambda i: (i, 0)),
        compiler_params=pltpu.CompilerParams(
            dimension_semantics=("parallel",),
            vmem_limit_bytes=vmem_limit,
        ),
        cost_estimate=cost,
    )(x_in, w1, b1, w2, b2, w3, b3)

    if b_pad != B:
        out = out[:B]
    if out_cols != out_features:
        out = out[:, :out_features]
    return out


def _reference_forward(x, w1, b1, w2, b2, w3, b3):
    h1 = jnp.maximum(x @ w1.T + b1, 0.0)
    h2 = jnp.maximum(h1 @ w2.T + b2, 0.0)
    return h2 @ w3.T + b3


if __name__ == "__main__":
    # Small shapes consistent with the module's forward.
    batch = 8
    input_size = 16
    hidden_size = 32
    output_size = 8

    key = jax.random.PRNGKey(0)
    kx, k1, k2, k3, kb1, kb2, kb3 = jax.random.split(key, 7)

    x = jax.random.normal(kx, (batch, input_size), dtype=jnp.float32)

    # Deterministic parameter init (mimics nn.Linear uniform init ranges).
    def init_linear(kw, kb, out_f, in_f):
        bound = 1.0 / jnp.sqrt(in_f)
        w = jax.random.uniform(kw, (out_f, in_f), minval=-bound, maxval=bound,
                               dtype=jnp.float32)
        b = jax.random.uniform(kb, (out_f,), minval=-bound, maxval=bound,
                               dtype=jnp.float32)
        return w, b

    w1, b1 = init_linear(k1, kb1, hidden_size, input_size)
    w2, b2 = init_linear(k2, kb2, hidden_size, hidden_size)
    w3, b3 = init_linear(k3, kb3, output_size, hidden_size)

    ref = _reference_forward(x, w1, b1, w2, b2, w3, b3)

    # Opt-in exact f32 path.
    params_f32 = prepare_params(w1, b1, w2, b2, w3, b3, compute_dtype=jnp.float32)
    out_f32 = jax.block_until_ready(torch_mind_forward(x, params_f32, output_size))
    assert out_f32.shape == (batch, output_size)
    assert jnp.allclose(out_f32, ref, atol=1e-5, rtol=1e-4)

    # Default bf16 fast path (native MXU bf16-in / f32-accumulate). Activations are
    # requantized to bf16 between layers, so error compounds over the three matmuls
    # relative to the f32 reference — hence the loose tolerance.
    params_bf16 = prepare_params(w1, b1, w2, b2, w3, b3)
    out_bf16 = jax.block_until_ready(torch_mind_forward(x, params_bf16, output_size))
    assert out_bf16.shape == (batch, output_size)
    assert jnp.allclose(out_bf16.astype(jnp.float32), ref, atol=8e-2, rtol=8e-2)

    print("KERNEL_OK")
</pallas_src>

<mosaic_0001>
module attributes {stable_mosaic.version = 11 : i64} {
  func.func @_mlp_kernel(%arg0: i32, %arg1: memref<16x16xf32, #tpu.memory_space<vmem>>, %arg2: memref<16x128xf32, #tpu.memory_space<vmem>>, %arg3: memref<1x128xf32, #tpu.memory_space<vmem>>, %arg4: memref<128x128xf32, #tpu.memory_space<vmem>>, %arg5: memref<1x128xf32, #tpu.memory_space<vmem>>, %arg6: memref<128x8xf32, #tpu.memory_space<vmem>>, %arg7: memref<1x8xf32, #tpu.memory_space<vmem>>, %arg8: memref<16x8xf32, #tpu.memory_space<vmem>>) attributes {dimension_semantics = [#tpu.dimension_semantics<parallel>], iteration_bounds = array<i64: 1>, scalar_prefetch = 0 : i64, scratch_operands = 0 : i64, tpu.core_type = #tpu.core_type<tc>, window_params = [{transform_indices = @transform_0, window_bounds = array<i64: 16, 16>}, {pipeline_mode = #tpu.pipeline_mode<synchronous>, transform_indices = @transform_1, window_bounds = array<i64: 16, 128>}, {pipeline_mode = #tpu.pipeline_mode<synchronous>, transform_indices = @transform_2, window_bounds = array<i64: 1, 128>}, {pipeline_mode = #tpu.pipeline_mode<synchronous>, transform_indices = @transform_3, window_bounds = array<i64: 128, 128>}, {pipeline_mode = #tpu.pipeline_mode<synchronous>, transform_indices = @transform_4, window_bounds = array<i64: 1, 128>}, {pipeline_mode = #tpu.pipeline_mode<synchronous>, transform_indices = @transform_5, window_bounds = array<i64: 128, 8>}, {pipeline_mode = #tpu.pipeline_mode<synchronous>, transform_indices = @transform_6, window_bounds = array<i64: 1, 8>}, {transform_indices = @transform_7, window_bounds = array<i64: 16, 8>}]} {
    %c0 = arith.constant 0 : index
    %c0_0 = arith.constant 0 : index
    %0 = vector.load %arg1[%c0, %c0_0] : memref<16x16xf32, #tpu.memory_space<vmem>>, vector<16x16xf32>
    %c0_1 = arith.constant 0 : index
    %c0_2 = arith.constant 0 : index
    %1 = vector.load %arg2[%c0_1, %c0_2] : memref<16x128xf32, #tpu.memory_space<vmem>>, vector<16x128xf32>
    %cst = arith.constant dense<0.000000e+00> : vector<16x128xf32>
    %2 = tpu.matmul %0, %1, %cst {dimension_numbers = #tpu.dot_dimension_numbers<[1], [0], [0], [1], [0, 0, 1, 1], [], []>} : vector<16x16xf32>, vector<16x128xf32>, vector<16x128xf32> -> vector<16x128xf32>
    %c0_3 = arith.constant 0 : index
    %c0_4 = arith.constant 0 : index
    %3 = vector.load %arg3[%c0_3, %c0_4] : memref<1x128xf32, #tpu.memory_space<vmem>>, vector<1x128xf32>
    %4 = vector.broadcast %3 : vector<1x128xf32> to vector<16x128xf32>
    %5 = arith.addf %2, %4 : vector<16x128xf32>
    %cst_5 = arith.constant 0.000000e+00 : f32
    %6 = vector.broadcast %cst_5 : f32 to vector<16x128xf32>
    %7 = arith.maximumf %5, %6 : vector<16x128xf32>
    %c0_6 = arith.constant 0 : index
    %c0_7 = arith.constant 0 : index
    %8 = vector.load %arg4[%c0_6, %c0_7] : memref<128x128xf32, #tpu.memory_space<vmem>>, vector<128x128xf32>
    %cst_8 = arith.constant dense<0.000000e+00> : vector<16x128xf32>
    %9 = tpu.matmul %7, %8, %cst_8 {dimension_numbers = #tpu.dot_dimension_numbers<[1], [0], [0], [1], [0, 0, 1, 1], [], []>} : vector<16x128xf32>, vector<128x128xf32>, vector<16x128xf32> -> vector<16x128xf32>
    %c0_9 = arith.constant 0 : index
    %c0_10 = arith.constant 0 : index
    %10 = vector.load %arg5[%c0_9, %c0_10] : memref<1x128xf32, #tpu.memory_space<vmem>>, vector<1x128xf32>
    %11 = vector.broadcast %10 : vector<1x128xf32> to vector<16x128xf32>
    %12 = arith.addf %9, %11 : vector<16x128xf32>
    %cst_11 = arith.constant 0.000000e+00 : f32
    %13 = vector.broadcast %cst_11 : f32 to vector<16x128xf32>
    %14 = arith.maximumf %12, %13 : vector<16x128xf32>
    %c0_12 = arith.constant 0 : index
    %c0_13 = arith.constant 0 : index
    %15 = vector.load %arg6[%c0_12, %c0_13] : memref<128x8xf32, #tpu.memory_space<vmem>>, vector<128x8xf32>
    %cst_14 = arith.constant dense<0.000000e+00> : vector<16x8xf32>
    %16 = tpu.matmul %14, %15, %cst_14 {dimension_numbers = #tpu.dot_dimension_numbers<[1], [0], [0], [1], [0, 0, 1, 1], [], []>} : vector<16x128xf32>, vector<128x8xf32>, vector<16x8xf32> -> vector<16x8xf32>
    %c0_15 = arith.constant 0 : index
    %c0_16 = arith.constant 0 : index
    %17 = vector.load %arg7[%c0_15, %c0_16] : memref<1x8xf32, #tpu.memory_space<vmem>>, vector<1x8xf32>
    %18 = vector.broadcast %17 : vector<1x8xf32> to vector<16x8xf32>
    %19 = arith.addf %16, %18 : vector<16x8xf32>
    %c0_17 = arith.constant 0 : index
    %c0_18 = arith.constant 0 : index
    %20 = vector.load %arg8[%c0_17, %c0_18] : memref<16x8xf32, #tpu.memory_space<vmem>>, vector<16x8xf32>
    tpu.vector_store %arg8[%c0_17, %c0_18], %19 {strides = array<i32>} : memref<16x8xf32, #tpu.memory_space<vmem>>, vector<16x8xf32>,
    return
  }
  func.func @transform_0(%arg0: i32) -> (i32, i32) {
    %c0_i32 = arith.constant 0 : i32
    %c0_i32_0 = arith.constant 0 : i32
    return %arg0, %c0_i32 : i32, i32
  }
  func.func @transform_1(%arg0: i32) -> (i32, i32) {
    %c0_i32 = arith.constant 0 : i32
    %c0_i32_0 = arith.constant 0 : i32
    %c0_i32_1 = arith.constant 0 : i32
    return %c0_i32, %c0_i32_0 : i32, i32
  }
  func.func @transform_2(%arg0: i32) -> (i32, i32) {
    %c0_i32 = arith.constant 0 : i32
    %c0_i32_0 = arith.constant 0 : i32
    %c0_i32_1 = arith.constant 0 : i32
    return %c0_i32, %c0_i32_0 : i32, i32
  }
  func.func @transform_3(%arg0: i32) -> (i32, i32) {
    %c0_i32 = arith.constant 0 : i32
    %c0_i32_0 = arith.constant 0 : i32
    %c0_i32_1 = arith.constant 0 : i32
    return %c0_i32, %c0_i32_0 : i32, i32
  }
  func.func @transform_4(%arg0: i32) -> (i32, i32) {
    %c0_i32 = arith.constant 0 : i32
    %c0_i32_0 = arith.constant 0 : i32
    %c0_i32_1 = arith.constant 0 : i32
    return %c0_i32, %c0_i32_0 : i32, i32
  }
  func.func @transform_5(%arg0: i32) -> (i32, i32) {
    %c0_i32 = arith.constant 0 : i32
    %c0_i32_0 = arith.constant 0 : i32
    %c0_i32_1 = arith.constant 0 : i32
    return %c0_i32, %c0_i32_0 : i32, i32
  }
  func.func @transform_6(%arg0: i32) -> (i32, i32) {
    %c0_i32 = arith.constant 0 : i32
    %c0_i32_0 = arith.constant 0 : i32
    %c0_i32_1 = arith.constant 0 : i32
    return %c0_i32, %c0_i32_0 : i32, i32
  }
  func.func @transform_7(%arg0: i32) -> (i32, i32) {
    %c0_i32 = arith.constant 0 : i32
    %c0_i32_0 = arith.constant 0 : i32
    return %arg0, %c0_i32 : i32, i32
  }
}

</mosaic_0001>

<bundles_post_ra>
// kernel: torch_mind_forward.1
= control target key start
LH: loop header
LB: loop body
LE: loop exit
PB: predicated region body
PF: predicated region fallthrough
CT: control target
= control target key end

     0   :  { %vm37_vm0 = vcmask 130048   ;;  %vm319_vm1 = vcmask 64512   ;;  %s681_s1 = inlined_call_operand.vmem [shape: f32[16,128], index: 1, kind: input, shape index: {}]   ;;  %s682_s0 = inlined_call_operand.vmem [shape: f32[16,16], index: 0, kind: input, shape index: {}]   ;;  %s683_s3 = inlined_call_operand.vmem [shape: f32[128,128], index: 3, kind: input, shape index: {}]   ;;  %s684_s5 = inlined_call_operand.vmem [shape: f32[128,8], index: 5, kind: input, shape index: {}]   ;;  %s685_s2 = inlined_call_operand.vmem [shape: f32[1,128], index: 2, kind: input, shape index: {}]   ;;  %s686_s4 = inlined_call_operand.vmem [shape: f32[1,128], index: 4, kind: input, shape index: {}]   ;;  %s687_s6 = inlined_call_operand.vmem [shape: f32[1,8], index: 6, kind: input, shape index: {}]   ;;  %s688_s7 = inlined_call_operand.vmem [shape: f32[16,8], index: 7, kind: output, shape index: {}]  }
   0x1   :  { %v28_v0 = vld [vmem:[%s681_s1] sm:$0xff]  ;;  %v29_v1 = vld [vmem:[%s681_s1 + $0x8] sm:$0xff]  ;;  %v123_v7 = vld [vmem:[%s683_s3 + $0x10] sm:$0xff] }
   0x2   :  { %v26_v2 = vld [vmem:[%s682_s0] sm:$0xff]  ;;  %v448_v3 = vpack.c.bf16 %v29_v1, %v28_v0  ;;  %v122_v5 = vld [vmem:[%s683_s3 + $0x8] sm:$0xff]  ;;  %v124_v8 = vld [vmem:[%s683_s3 + $0x18] sm:$0xff] }
   0x3   :  { %375 = vmatprep.mubr.msk.f32.mxu0 %vm37_vm0, %v26_v2  ;;  %v121_v4 = vld [vmem:[%s683_s3] sm:$0xff]  ;;  %v456_v9 = vpack.c.bf16 %v124_v8, %v123_v7  ;;  %v126_v11 = vld [vmem:[%s683_s3 + $0x28] sm:$0xff]  ;;  %v127_v14 = vld [vmem:[%s683_s3 + $0x30] sm:$0xff] }
   0x4   :  { %v452_v6 = vpack.c.bf16 %v122_v5, %v121_v4  ;;  %449 = vmatprep.subr.bf16.mxu0 %v448_v3  ;;  %v125_v10 = vld [vmem:[%s683_s3 + $0x20] sm:$0xff]  ;;  %v27_v12 = vld [vmem:[%s682_s0 + $0x8] sm:$0xff]  ;;  %v128_v15 = vld [vmem:[%s683_s3 + $0x38] sm:$0xff] }
   0x5   :  { %451 = vmatpush3.bf16.msra.mxu0 %v448_v3  ;;  %v460_v13 = vpack.c.bf16 %v126_v11, %v125_v10  ;;  %v464_v16 = vpack.c.bf16 %v128_v15, %v127_v14  ;;  %v129_v17 = vld [vmem:[%s683_s3 + $0x40] sm:$0xff]  ;;  %v130_v18 = vld [vmem:[%s683_s3 + $0x48] sm:$0xff]  ;;  %v131_v20 = vld [vmem:[%s683_s3 + $0x50] sm:$0xff] }
   0x6   :  { %453 = vmatprep.subr.bf16.mxu1 %v452_v6  ;;  %v468_v19 = vpack.c.bf16 %v130_v18, %v129_v17  ;;  %v132_v21 = vld [vmem:[%s683_s3 + $0x58] sm:$0xff]  ;;  %v133_v23 = vld [vmem:[%s683_s3 + $0x60] sm:$0xff]  ;;  %v134_v24 = vld [vmem:[%s683_s3 + $0x68] sm:$0xff] }
   0x7   :  { %455 = vmatpush3.bf16.msra.mxu1 %v452_v6  ;;  %v472_v22 = vpack.c.bf16 %v132_v21, %v131_v20  ;;  %v476_v25 = vpack.c.bf16 %v134_v24, %v133_v23  ;;  %v135_v26 = vld [vmem:[%s683_s3 + $0x70] sm:$0xff]  ;;  %v136_v27 = vld [vmem:[%s683_s3 + $0x78] sm:$0xff]  ;;  %v221_v29 = vld [vmem:[%s684_s5] sm:$0xff] }
   0x8   :  { %457 = vmatprep.subr.bf16.mxu1 %v456_v9  ;;  %376 = vmatmul.mubr.msk.f32.vlgmr.msra.gmra.mrb[0].mxu0 %vm37_vm0, %v27_v12  ;;  %v480_v28 = vpack.c.bf16 %v136_v27, %v135_v26  ;;  %v222_v30 = vld [vmem:[%s684_s5 + $0x8] sm:$0xff]  ;;  %v223_v31 = vld [vmem:[%s684_s5 + $0x10] sm:$0xff]  ;;  %v224_v33 = vld [vmem:[%s684_s5 + $0x18] sm:$0xff] }
   0x9   :  { %v484_v32 = vpack.c.bf16 %v222_v30, %v221_v29  ;;  %v488_v34 = vpack.c.bf16 %v224_v33, %v223_v31  ;;  %v225_v35 = vld [vmem:[%s684_s5 + $0x20] sm:$0xff]  ;;  %v226_v36 = vld [vmem:[%s684_s5 + $0x28] sm:$0xff]  ;;  %v227_v38 = vld [vmem:[%s684_s5 + $0x30] sm:$0xff] }
   0xa   :  { %v492_v37 = vpack.c.bf16 %v226_v36, %v225_v35  ;;  %v228_v39 = vld [vmem:[%s684_s5 + $0x38] sm:$0xff]  ;;  %v229_v41 = vld [vmem:[%s684_s5 + $0x40] sm:$0xff]  ;;  %v230_v42 = vld [vmem:[%s684_s5 + $0x48] sm:$0xff] }
   0xb   :  { %459 = vmatpush3.bf16.msra.mxu1 %v456_v9  ;;  %485 = vmatprep.subr.bf16.mxu0 %v484_v32  ;;  %v496_v40 = vpack.c.bf16 %v228_v39, %v227_v38  ;;  %v500_v43 = vpack.c.bf16 %v230_v42, %v229_v41  ;;  %v231_v44 = vld [vmem:[%s684_s5 + $0x50] sm:$0xff]  ;;  %v232_v45 = vld [vmem:[%s684_s5 + $0x58] sm:$0xff]  ;;  %v233_v47 = vld [vmem:[%s684_s5 + $0x60] sm:$0xff] }
   0xc   :  { %461 = vmatprep.subr.bf16.mxu1 %v460_v13  ;;  %487 = vmatpush3.bf16.msra.mxu0 %v484_v32  ;;  %v504_v46 = vpack.c.bf16 %v232_v45, %v231_v44  ;;  %v234_v48 = vld [vmem:[%s684_s5 + $0x68] sm:$0xff]  ;;  %v326_v50 = vld [vmem:[%s685_s2] ss:$0 sm:$0xff]  ;;  %v235_v57 = vld [vmem:[%s684_s5 + $0x70] sm:$0xff] }
   0xd   :  { %489 = vmatprep.subr.bf16.mxu0 %v488_v34  ;;  %v508_v49 = vpack.c.bf16 %v234_v48, %v233_v47  ;;  %v236_v58 = vld [vmem:[%s684_s5 + $0x78] sm:$0xff]  ;;  %v329_v60 = vld [vmem:[%s686_s4] ss:$0 sm:$0xff] }
   0xe   :  { %v512_v59 = vpack.c.bf16 %v236_v58, %v235_v57  ;;  %v330_v3 = vld [vmem:[%s687_s6] ss:$0 sm:$0xff] }
   0xf   :  { %463 = vmatpush3.bf16.msra.mxu1 %v460_v13 }
  0x10   :  { %465 = vmatprep.subr.bf16.mxu1 %v464_v16  ;;  %491 = vmatpush3.bf16.msra.mxu0 %v488_v34 }
  0x11   :  { %493 = vmatprep.subr.bf16.mxu0 %v492_v37 }
  0x13   :  { %467 = vmatpush3.bf16.msra.mxu1 %v464_v16 }
  0x14   :  { %469 = vmatprep.subr.bf16.mxu1 %v468_v19  ;;  %495 = vmatpush3.bf16.msra.mxu0 %v492_v37 }
  0x15   :  { %497 = vmatprep.subr.bf16.mxu0 %v496_v40 }
  0x17   :  { %471 = vmatpush3.bf16.msra.mxu1 %v468_v19 }
  0x18   :  { %473 = vmatprep.subr.bf16.mxu1 %v472_v22  ;;  %499 = vmatpush3.bf16.msra.mxu0 %v496_v40 }
  0x19   :  { %501 = vmatprep.subr.bf16.mxu0 %v500_v43 }
  0x1b   :  { %475 = vmatpush3.bf16.msra.mxu1 %v472_v22 }
  0x1c   :  { %477 = vmatprep.subr.bf16.mxu1 %v476_v25  ;;  %503 = vmatpush3.bf16.msra.mxu0 %v500_v43 }
  0x1d   :  { %505 = vmatprep.subr.bf16.mxu0 %v504_v46 }
  0x1f   :  { %479 = vmatpush3.bf16.msra.mxu1 %v476_v25 }
  0x20   :  { %481 = vmatprep.subr.bf16.mxu1 %v480_v28  ;;  %507 = vmatpush3.bf16.msra.mxu0 %v504_v46 }
  0x21   :  { %509 = vmatprep.subr.bf16.mxu0 %v508_v49 }
  0x23   :  { %483 = vmatpush3.bf16.msra.mxu1 %v480_v28 }
  0x24   :  { %511 = vmatpush3.bf16.msra.mxu0 %v508_v49 }
  0x25   :  { %513 = vmatprep.subr.bf16.mxu0 %v512_v59 }
  0x28   :  { %515 = vmatpush3.bf16.msra.mxu0 %v512_v59 }
  0xdb   :  { %v377_v51 = vpop.f32.mrb[0].mxu0 }
  0xdc   :  { %v116_v52 = vadd.f32 %v377_v51, %v326_v50  ;;  %v110_v53 = vpop.f32.mrb[1].mxu0 }
  0xdd   :  { %v111_v54 = vadd.f32 %v326_v50, %v110_v53 }
  0xde   :  { %v120_v56 = vmax.f32 %v116_v52, 0.0 }
  0xdf   :  { %v119_v55 = vmax.f32 %v111_v54, 0.0 }
  0xe1   :  { %410 = vmatprep.mubr.f32.mxu1 %v119_v55 }
  0xe2   :  { %411 = vmatmul.mubr.f32.vlgmr.msra.gmra.mrb[0].mxu1 %v120_v56 }
 0x1b5   :  { %v412_v61 = vpop.f32.mrb[0].mxu1 }
 0x1b6   :  { %v216_v62 = vadd.f32 %v412_v61, %v329_v60  ;;  %v210_v63 = vpop.f32.mrb[1].mxu1 }
 0x1b7   :  { %v211_v0 = vadd.f32 %v329_v60, %v210_v63 }
 0x1b8   :  { %v220_v2 = vmax.f32 %v216_v62, 0.0 }
 0x1b9   :  { %v219_v1 = vmax.f32 %v211_v0, 0.0 }
 0x1bb   :  { %445 = vmatprep.mubr.f32.mxu0 %v219_v1 }
 0x1bc   :  { %446 = vmatmul.mubr.f32.vlgmr.msra.gmra.mrb[2].mxu0 %v220_v2 }
 0x28f   :  { %v447_v4 = vpop.f32.mrb[2].mxu0 }
 0x290   :  { %v316_v5 = vadd.f32 %v447_v4, %v330_v3  ;;  %v310_v6 = vpop.f32.mrb[3].mxu0 }
 0x291   :  { %v311_v7 = vadd.f32 %v330_v3, %v310_v6 }
 0x292   :  { %321 = vst.msk [vmem:[%s688_s7 + $0x8] sm:$0xff] %vm319_vm1, %v316_v5 }
 0x293   :  { %320 = vst.msk [vmem:[%s688_s7] sm:$0xff] %vm319_vm1, %v311_v7 }

</bundles_post_ra>
